<compile_context>
chip_gen: v7x
topology: tpu7x:2x2x1
jax: 0.10.0
libtpu: 0.0.40
codegen_flags: <defaults>
</compile_context>

<pallas_src>
import functools

import numpy as np
import jax
import jax.numpy as jnp
from jax.experimental import pallas as pl
from jax.experimental.pallas import tpu as pltpu


_VMEM_TILE_BUDGET = 24 * 1024 * 1024   # double-buffered in+out tiles
_MAX_BATCH_TILE = 2048                 # bound per-step register/spill pressure
_FLUSH_LANES = 512                     # min slab width for product stores


def _sublane_packing(dtype):
    itemsize = jnp.dtype(dtype).itemsize
    return max(8, 32 // max(itemsize, 1))     # 8 f32, 16 bf16, 32 int8/fp8


def _choose_batch_tile(B, F, out_cols, dtype, batch_tile=None):
    itemsize = jnp.dtype(dtype).itemsize
    sub = _sublane_packing(dtype)
    if batch_tile is not None:
        tb = max(1, min(int(batch_tile), B))
        if B > sub:
            tb = max(sub, (tb // sub) * sub)
        return tb
    if B <= sub:
        return B                              # single tile == full (tiny) batch
    row_bytes = 2 * (F + out_cols) * itemsize  # double-buffered input + output
    tb_max = max(sub, _VMEM_TILE_BUDGET // row_bytes)
    tb_max = min(tb_max, _MAX_BATCH_TILE, B)
    n_tiles = pl.cdiv(B, tb_max)
    # v7x megacore: give the 'parallel' batch axis >= 2 steps when there is
    # enough work to make sharding across the two TensorCores worthwhile.
    if n_tiles < 2 and B >= 2 * sub and B * (F + out_cols) * itemsize >= (1 << 20):
        n_tiles = 2
    # Even tiles rounded to the sublane packing -> bounded padding waste.
    tb = pl.cdiv(pl.cdiv(B, n_tiles), sub) * sub
    return min(tb, pl.cdiv(B, sub) * sub)


def _outer_product_kernel(x_ref, out_ref, *, in_features, flush_lanes):
    """out[:, :F] = x; out[:, F+k] = x[:, i_k] * x[:, j_k] in triu order."""
    F = in_features
    dt = out_ref.dtype
    # Assemble wide slabs in registers, flush with lane-dense stores.
    pieces = [x_ref[...].astype(dt)]          # input copy -> columns [0, F)
    width = F
    offset = 0
    for i in range(F):
        # Row i of the upper triangle: x[:, i] * x[:, i:]  (pure VPU work).
        pieces.append((x_ref[:, i:i + 1] * x_ref[:, i:]).astype(dt))
        width += F - i
        if width >= flush_lanes or i == F - 1:
            slab = pieces[0] if len(pieces) == 1 else jnp.concatenate(pieces, axis=1)
            out_ref[:, offset:offset + width] = slab
            offset += width
            pieces, width = [], 0


def outer_product_layer(x, *, batch_tile=None):
    """JAX/Pallas equivalent of OuterProductLayer.forward."""
    if x.ndim == 1:
        x = x[None, :]
    B, F = x.shape
    P = F * (F + 1) // 2
    out_cols = F + P
    itemsize = jnp.dtype(x.dtype).itemsize

    tb = _choose_batch_tile(B, F, out_cols, x.dtype, batch_tile)
    Bp = pl.cdiv(B, tb) * tb
    xp = x if Bp == B else jnp.pad(x, ((0, Bp - B), (0, 0)))

    tile_bytes = 2 * (tb * F + tb * out_cols) * itemsize
    vmem_limit = int(min(48 * 1024 * 1024, max(2 * tile_bytes, 16 * 1024 * 1024)))

    kernel = functools.partial(
        _outer_product_kernel, in_features=F, flush_lanes=_FLUSH_LANES)

    out = pl.pallas_call(
        kernel,
        out_shape=jax.ShapeDtypeStruct((Bp, out_cols), x.dtype),
        grid=(Bp // tb,),
        in_specs=[pl.BlockSpec((tb, F), lambda b: (b, 0))],
        out_specs=pl.BlockSpec((tb, out_cols), lambda b: (b, 0)),
        compiler_params=pltpu.CompilerParams(
            dimension_semantics=("parallel",),
            vmem_limit_bytes=vmem_limit),
        cost_estimate=pl.CostEstimate(
            flops=int(Bp) * P,
            transcendentals=0,
            bytes_accessed=int(Bp) * (F + out_cols) * itemsize),
    )(xp)

    return out if Bp == B else out[:B]


def _reference(x):
    """Pure-numpy reference mirroring the PyTorch forward."""
    x = np.asarray(x)
    if x.ndim == 1:
        x = x[None, :]
    F = x.shape[1]
    rows, cols = np.triu_indices(F, k=0)
    products = x[:, None, :] * x[:, :, None]      # [b, i, j] = x[b, j] * x[b, i]
    products = products[:, rows, cols].reshape(x.shape[0], -1)
    return np.concatenate([x, products], axis=1)


if __name__ == "__main__":
    key = jax.random.PRNGKey(0)
    k0, k1, k2, k3 = jax.random.split(key, 4)

    # Primary small shape: batch=8, in_features=16 -> output (8, 152).
    B, F = 8, 16
    x = jax.random.normal(k0, (B, F), dtype=jnp.float32)
    out = jax.block_until_ready(outer_product_layer(x))
    assert out.shape == (B, F * (F + 3) // 2), out.shape
    np.testing.assert_allclose(np.asarray(out), _reference(x), rtol=1e-5, atol=1e-5)

    # Multi-tile batch grid with a padded remainder (grid=(2,), tile=8).
    x2 = jax.random.normal(k1, (13, F), dtype=jnp.float32)
    out2 = jax.block_until_ready(outer_product_layer(x2, batch_tile=8))
    np.testing.assert_allclose(np.asarray(out2), _reference(x2), rtol=1e-5, atol=1e-5)

    # 1-D input path (module promotes to a batch of 1).
    x3 = jax.random.normal(k2, (F,), dtype=jnp.float32)
    out3 = jax.block_until_ready(outer_product_layer(x3))
    np.testing.assert_allclose(np.asarray(out3), _reference(x3), rtol=1e-5, atol=1e-5)

    # bf16 path exercises dtype-aware sublane rounding (16-row packing).
    x4 = jax.random.normal(k3, (32, 8), dtype=jnp.bfloat16)
    out4 = jax.block_until_ready(outer_product_layer(x4))
    np.testing.assert_allclose(np.asarray(out4.astype(jnp.float32)),
                               _reference(np.asarray(x4.astype(jnp.float32))),
                               rtol=2e-2, atol=2e-2)

    print("KERNEL_OK")
</pallas_src>

<mosaic_0001>
module attributes {stable_mosaic.version = 11 : i64} {
  func.func @_outer_product_kernel(%arg0: i32, %arg1: memref<8x16xf32, #tpu.memory_space<vmem>>, %arg2: memref<8x152xf32, #tpu.memory_space<vmem>>) attributes {dimension_semantics = [#tpu.dimension_semantics<parallel>], iteration_bounds = array<i64: 1>, scalar_prefetch = 0 : i64, scratch_operands = 0 : i64, tpu.core_type = #tpu.core_type<tc>, window_params = [{transform_indices = @transform_0, window_bounds = array<i64: 8, 16>}, {transform_indices = @transform_1, window_bounds = array<i64: 8, 152>}]} {
    %c0 = arith.constant 0 : index
    %c0_0 = arith.constant 0 : index
    %0 = vector.load %arg1[%c0, %c0_0] : memref<8x16xf32, #tpu.memory_space<vmem>>, vector<8x16xf32>
    %c0_1 = arith.constant 0 : index
    %c0_2 = arith.constant 0 : index
    %1 = vector.load %arg1[%c0_1, %c0_2] : memref<8x16xf32, #tpu.memory_space<vmem>>, vector<8x1xf32>
    %c0_3 = arith.constant 0 : index
    %c0_4 = arith.constant 0 : index
    %2 = vector.load %arg1[%c0_3, %c0_4] : memref<8x16xf32, #tpu.memory_space<vmem>>, vector<8x16xf32>
    %3 = vector.broadcast %1 : vector<8x1xf32> to vector<8x16xf32>
    %4 = arith.mulf %3, %2 : vector<8x16xf32>
    %c0_5 = arith.constant 0 : index
    %c1 = arith.constant 1 : index
    %5 = vector.load %arg1[%c0_5, %c1] : memref<8x16xf32, #tpu.memory_space<vmem>>, vector<8x1xf32>
    %c0_6 = arith.constant 0 : index
    %c1_7 = arith.constant 1 : index
    %6 = vector.load %arg1[%c0_6, %c1_7] : memref<8x16xf32, #tpu.memory_space<vmem>>, vector<8x15xf32>
    %7 = vector.broadcast %5 : vector<8x1xf32> to vector<8x15xf32>
    %8 = arith.mulf %7, %6 : vector<8x15xf32>
    %c0_8 = arith.constant 0 : index
    %c2 = arith.constant 2 : index
    %9 = vector.load %arg1[%c0_8, %c2] : memref<8x16xf32, #tpu.memory_space<vmem>>, vector<8x1xf32>
    %c0_9 = arith.constant 0 : index
    %c2_10 = arith.constant 2 : index
    %10 = vector.load %arg1[%c0_9, %c2_10] : memref<8x16xf32, #tpu.memory_space<vmem>>, vector<8x14xf32>
    %11 = vector.broadcast %9 : vector<8x1xf32> to vector<8x14xf32>
    %12 = arith.mulf %11, %10 : vector<8x14xf32>
    %c0_11 = arith.constant 0 : index
    %c3 = arith.constant 3 : index
    %13 = vector.load %arg1[%c0_11, %c3] : memref<8x16xf32, #tpu.memory_space<vmem>>, vector<8x1xf32>
    %c0_12 = arith.constant 0 : index
    %c3_13 = arith.constant 3 : index
    %14 = vector.load %arg1[%c0_12, %c3_13] : memref<8x16xf32, #tpu.memory_space<vmem>>, vector<8x13xf32>
    %15 = vector.broadcast %13 : vector<8x1xf32> to vector<8x13xf32>
    %16 = arith.mulf %15, %14 : vector<8x13xf32>
    %c0_14 = arith.constant 0 : index
    %c4 = arith.constant 4 : index
    %17 = vector.load %arg1[%c0_14, %c4] : memref<8x16xf32, #tpu.memory_space<vmem>>, vector<8x1xf32>
    %c0_15 = arith.constant 0 : index
    %c4_16 = arith.constant 4 : index
    %18 = vector.load %arg1[%c0_15, %c4_16] : memref<8x16xf32, #tpu.memory_space<vmem>>, vector<8x12xf32>
    %19 = vector.broadcast %17 : vector<8x1xf32> to vector<8x12xf32>
    %20 = arith.mulf %19, %18 : vector<8x12xf32>
    %c0_17 = arith.constant 0 : index
    %c5 = arith.constant 5 : index
    %21 = vector.load %arg1[%c0_17, %c5] : memref<8x16xf32, #tpu.memory_space<vmem>>, vector<8x1xf32>
    %c0_18 = arith.constant 0 : index
    %c5_19 = arith.constant 5 : index
    %22 = vector.load %arg1[%c0_18, %c5_19] : memref<8x16xf32, #tpu.memory_space<vmem>>, vector<8x11xf32>
    %23 = vector.broadcast %21 : vector<8x1xf32> to vector<8x11xf32>
    %24 = arith.mulf %23, %22 : vector<8x11xf32>
    %c0_20 = arith.constant 0 : index
    %c6 = arith.constant 6 : index
    %25 = vector.load %arg1[%c0_20, %c6] : memref<8x16xf32, #tpu.memory_space<vmem>>, vector<8x1xf32>
    %c0_21 = arith.constant 0 : index
    %c6_22 = arith.constant 6 : index
    %26 = vector.load %arg1[%c0_21, %c6_22] : memref<8x16xf32, #tpu.memory_space<vmem>>, vector<8x10xf32>
    %27 = vector.broadcast %25 : vector<8x1xf32> to vector<8x10xf32>
    %28 = arith.mulf %27, %26 : vector<8x10xf32>
    %c0_23 = arith.constant 0 : index
    %c7 = arith.constant 7 : index
    %29 = vector.load %arg1[%c0_23, %c7] : memref<8x16xf32, #tpu.memory_space<vmem>>, vector<8x1xf32>
    %c0_24 = arith.constant 0 : index
    %c7_25 = arith.constant 7 : index
    %30 = vector.load %arg1[%c0_24, %c7_25] : memref<8x16xf32, #tpu.memory_space<vmem>>, vector<8x9xf32>
    %31 = vector.broadcast %29 : vector<8x1xf32> to vector<8x9xf32>
    %32 = arith.mulf %31, %30 : vector<8x9xf32>
    %c0_26 = arith.constant 0 : index
    %c8 = arith.constant 8 : index
    %33 = vector.load %arg1[%c0_26, %c8] : memref<8x16xf32, #tpu.memory_space<vmem>>, vector<8x1xf32>
    %c0_27 = arith.constant 0 : index
    %c8_28 = arith.constant 8 : index
    %34 = vector.load %arg1[%c0_27, %c8_28] : memref<8x16xf32, #tpu.memory_space<vmem>>, vector<8x8xf32>
    %35 = vector.broadcast %33 : vector<8x1xf32> to vector<8x8xf32>
    %36 = arith.mulf %35, %34 : vector<8x8xf32>
    %c0_29 = arith.constant 0 : index
    %c9 = arith.constant 9 : index
    %37 = vector.load %arg1[%c0_29, %c9] : memref<8x16xf32, #tpu.memory_space<vmem>>, vector<8x1xf32>
    %c0_30 = arith.constant 0 : index
    %c9_31 = arith.constant 9 : index
    %38 = vector.load %arg1[%c0_30, %c9_31] : memref<8x16xf32, #tpu.memory_space<vmem>>, vector<8x7xf32>
    %39 = vector.broadcast %37 : vector<8x1xf32> to vector<8x7xf32>
    %40 = arith.mulf %39, %38 : vector<8x7xf32>
    %c0_32 = arith.constant 0 : index
    %c10 = arith.constant 10 : index
    %41 = vector.load %arg1[%c0_32, %c10] : memref<8x16xf32, #tpu.memory_space<vmem>>, vector<8x1xf32>
    %c0_33 = arith.constant 0 : index
    %c10_34 = arith.constant 10 : index
    %42 = vector.load %arg1[%c0_33, %c10_34] : memref<8x16xf32, #tpu.memory_space<vmem>>, vector<8x6xf32>
    %43 = vector.broadcast %41 : vector<8x1xf32> to vector<8x6xf32>
    %44 = arith.mulf %43, %42 : vector<8x6xf32>
    %c0_35 = arith.constant 0 : index
    %c11 = arith.constant 11 : index
    %45 = vector.load %arg1[%c0_35, %c11] : memref<8x16xf32, #tpu.memory_space<vmem>>, vector<8x1xf32>
    %c0_36 = arith.constant 0 : index
    %c11_37 = arith.constant 11 : index
    %46 = vector.load %arg1[%c0_36, %c11_37] : memref<8x16xf32, #tpu.memory_space<vmem>>, vector<8x5xf32>
    %47 = vector.broadcast %45 : vector<8x1xf32> to vector<8x5xf32>
    %48 = arith.mulf %47, %46 : vector<8x5xf32>
    %c0_38 = arith.constant 0 : index
    %c12 = arith.constant 12 : index
    %49 = vector.load %arg1[%c0_38, %c12] : memref<8x16xf32, #tpu.memory_space<vmem>>, vector<8x1xf32>
    %c0_39 = arith.constant 0 : index
    %c12_40 = arith.constant 12 : index
    %50 = vector.load %arg1[%c0_39, %c12_40] : memref<8x16xf32, #tpu.memory_space<vmem>>, vector<8x4xf32>
    %51 = vector.broadcast %49 : vector<8x1xf32> to vector<8x4xf32>
    %52 = arith.mulf %51, %50 : vector<8x4xf32>
    %c0_41 = arith.constant 0 : index
    %c13 = arith.constant 13 : index
    %53 = vector.load %arg1[%c0_41, %c13] : memref<8x16xf32, #tpu.memory_space<vmem>>, vector<8x1xf32>
    %c0_42 = arith.constant 0 : index
    %c13_43 = arith.constant 13 : index
    %54 = vector.load %arg1[%c0_42, %c13_43] : memref<8x16xf32, #tpu.memory_space<vmem>>, vector<8x3xf32>
    %55 = vector.broadcast %53 : vector<8x1xf32> to vector<8x3xf32>
    %56 = arith.mulf %55, %54 : vector<8x3xf32>
    %c0_44 = arith.constant 0 : index
    %c14 = arith.constant 14 : index
    %57 = vector.load %arg1[%c0_44, %c14] : memref<8x16xf32, #tpu.memory_space<vmem>>, vector<8x1xf32>
    %c0_45 = arith.constant 0 : index
    %c14_46 = arith.constant 14 : index
    %58 = vector.load %arg1[%c0_45, %c14_46] : memref<8x16xf32, #tpu.memory_space<vmem>>, vector<8x2xf32>
    %59 = vector.broadcast %57 : vector<8x1xf32> to vector<8x2xf32>
    %60 = arith.mulf %59, %58 : vector<8x2xf32>
    %c0_47 = arith.constant 0 : index
    %c15 = arith.constant 15 : index
    %61 = vector.load %arg1[%c0_47, %c15] : memref<8x16xf32, #tpu.memory_space<vmem>>, vector<8x1xf32>
    %c0_48 = arith.constant 0 : index
    %c15_49 = arith.constant 15 : index
    %62 = vector.load %arg1[%c0_48, %c15_49] : memref<8x16xf32, #tpu.memory_space<vmem>>, vector<8x1xf32>
    %63 = arith.mulf %61, %62 : vector<8x1xf32>
    %64 = tpu.concatenate %0, %4, %8, %12, %16, %20, %24, %28, %32, %36, %40, %44, %48, %52, %56, %60 in 1 : vector<8x16xf32>, vector<8x16xf32>, vector<8x15xf32>, vector<8x14xf32>, vector<8x13xf32>, vector<8x12xf32>, vector<8x11xf32>, vector<8x10xf32>, vector<8x9xf32>, vector<8x8xf32>, vector<8x7xf32>, vector<8x6xf32>, vector<8x5xf32>, vector<8x4xf32>, vector<8x3xf32>, vector<8x2xf32> -> vector<8x151xf32>
    %65 = tpu.concatenate %64, %63 in 1 : vector<8x151xf32>, vector<8x1xf32> -> vector<8x152xf32>
    %c0_50 = arith.constant 0 : index
    %c0_51 = arith.constant 0 : index
    %66 = vector.load %arg2[%c0_50, %c0_51] : memref<8x152xf32, #tpu.memory_space<vmem>>, vector<8x152xf32>
    tpu.vector_store %arg2[%c0_50, %c0_51], %65 {strides = array<i32>} : memref<8x152xf32, #tpu.memory_space<vmem>>, vector<8x152xf32>,
    return
  }
  func.func @transform_0(%arg0: i32) -> (i32, i32) {
    %c0_i32 = arith.constant 0 : i32
    %c0_i32_0 = arith.constant 0 : i32
    return %arg0, %c0_i32 : i32, i32
  }
  func.func @transform_1(%arg0: i32) -> (i32, i32) {
    %c0_i32 = arith.constant 0 : i32
    %c0_i32_0 = arith.constant 0 : i32
    return %arg0, %c0_i32 : i32, i32
  }
}

</mosaic_0001>

<bundles_post_ra>
// kernel: tpu_custom_call.1
= control target key start
LH: loop header
LB: loop body
LE: loop exit
PB: predicated region body
PF: predicated region fallthrough
CT: control target
= control target key end

     0   :  { %6 = vsyncpa [#allocation3], 0  ;;  %s411_s0 = inlined_call_operand.hbm [shape: f32[8,16], index: 0, kind: input, shape index: {}]   ;;  %s412_s1 = inlined_call_operand.hbm [shape: f32[8,152], index: 1, kind: output, shape index: {}]  }
   0x1   :  { %7 = vsyncpa [#allocation4], 0  ;;  %s309_s6 = smov [#allocation2]   ;;  %s261_s10 = scalar_lea.hbm %s411_s0, 128 }
   0x2   :  { %s14_s7 = sshll.u32 %s309_s6, 4  ;;  %p262_p0 = scmp.ne.s32.totalorder %s411_s0, %s261_s10  ;;  %s15_s7 = int_to_ptr.vmem [resolvable:$true] %s14_s7 }
   0x3   :  { %p265_p1 = scmp.lt.u32.totalorder %s261_s10, %s411_s0 }
   0x5   :  { %p267_p2 = pnand %p265_p1, %p262_p0 }
   0x7   :  { %270 = shalt.err (!%p267_p2)
}
   0x8   :  { %s271_s15 = scalar_lea.vmem %s15_s7, 128  ;;  %p276_p4 = scmp.lt.s32.totalorder %s15_s7, %s15_s7 }
   0x9   :  { %p272_p3 = scmp.ne.s32.totalorder %s15_s7, %s271_s15  ;;  %p277_p5 = scmp.lt.s32.totalorder %s271_s15, %s271_s15 }
   0xb   :  { %p278_p6 = por %p277_p5, %p276_p4 }
   0xd   :  { %p279_p7 = pnand %p278_p6, %p272_p3 }
   0xf   :  { %282 = shalt.err (!%p279_p7)
}
  0x10   :  { %17 = dma.hbm_to_vmem [thread:$0]  %s411_s0, 128, %s15_s7, [#allocation3]  }
  0x11   :  { %305 = dma.done.wait [#allocation3], 128  }
  0x12   :  { %306 = vsyncadd [#allocation3], 4294967168  ;;  %v310_v0 = vmov 2   ;;  %v311_v1 = vmov 0   ;;  %v364_v2 = vld [vmem:[#allocation2] sm:$0xff]  ;;  %v312_v3 = vmov 3  }
  0x13   :  { %248 = vset.pattern.permute.xlu1 %v310_v0  ;;  %246 = vset.pattern.permute.xlu0 %v311_v1  ;;  %v313_v4 = vmov 1   ;;  %v314_v5 = vmov 4   ;;  %v315_v6 = vmov 9   ;;  %v316_v7 = vmov 10   ;;  %s325_s0 = smov 45   ;;  %s326_s18 = smov 16  }
  0x14   :  { %34 = vperm.xlu1 %248, %v364_v2   ;;  %24 = vperm.xlu0 %246, %v364_v2   ;;  %v317_v8 = vmov 11   ;;  %v318_v9 = vmov 5   ;;  %v319_v10 = vmov 7   ;;  %v320_v11 = vmov 6   ;;  %s327_s19 = smov 31   ;;  %s328_s20 = smov 58  }
  0x15   :  { %v321_v12 = vmov 14   ;;  %v322_v13 = vmov 12   ;;  %v323_v14 = vmov 13   ;;  %v324_v15 = vmov 8   ;;  %s329_s21 = smov 70   ;;  %s330_s22 = smov 115  }
  0x16   :  { %s331_s23 = smov 121   ;;  %s332_s24 = smov 126   ;;  %v98_v46 = vmul.f32 %v364_v2, %v364_v2  ;;  %vm159_vm0 = vcmask 130048   ;;  %vm161_vm1 = vcmask 261120   ;;  %vm163_vm2 = vcmask 384000  }
  0x17   :  { %s333_s25 = smov 81   ;;  %s334_s26 = smov 91   ;;  %vm165_vm3 = vcmask 498688   ;;  %vm167_vm4 = vcmask 605184   ;;  %vm169_vm5 = vcmask 703488   ;;  %vm171_vm6 = vcmask 793600  }
  0x18   :  { %249 = vset.pattern.permute.xlu1 %v312_v3  ;;  %247 = vset.pattern.permute.xlu0 %v313_v4  ;;  %s335_s27 = smov 100   ;;  %s336_s28 = smov 2   ;;  %vm179_vm7 = vcmask 23552   ;;  %vm173_vm8 = vcmask 875520   ;;  %vm181_vm9 = vcmask 72704   ;;  %vm175_vm10 = vcmask 949248  }
  0x19   :  { %39 = vperm.xlu1 %249, %v364_v2   ;;  %29 = vperm.xlu0 %247, %v364_v2   ;;  %s337_s29 = smov 5   ;;  %s338_s30 = smov 7   ;;  %vm183_vm11 = vcmask 113664   ;;  %vm177_vm12 = vcmask 1014784   ;;  %vm185_vm13 = vcmask 146432   ;;  %vm187_vm14 = vcmask 171008  }
  0x1a   :  { %s339_s2 = smov 108   ;;  %s340_s3 = smov 8   ;;  %vm193_vm15 = vcmask 187392  }
  0x1b   :  { %s341_s4 = smov [#allocation5]  }
  0x1c   :  { %s204_s5 = sshll.u32 %s341_s4, 4  ;;  %s205_s5 = int_to_ptr.vmem [resolvable:$true] %s204_s5 }
  0x1d   :  { %250 = vset.pattern.permute.xlu1 %v314_v5  ;;  %251 = vset.pattern.permute.xlu0 %v315_v6  ;;  %s283_s6 = scalar_lea.vmem %s205_s5, 256  ;;  %p288_p9 = scmp.lt.s32.totalorder %s205_s5, %s205_s5 }
  0x1e   :  { %44 = vperm.xlu1 %250, %v364_v2   ;;  %69 = vperm.xlu0 %251, %v364_v2   ;;  %p284_p8 = scmp.ne.s32.totalorder %s205_s5, %s283_s6  ;;  %p289_p10 = scmp.lt.s32.totalorder %s283_s6, %s283_s6 }
  0x20   :  { %p290_p11 = por %p289_p10, %p288_p9 }
  0x22   :  { %252 = vset.pattern.permute.xlu1 %v316_v7  ;;  %254 = vset.pattern.permute.xlu0 %v317_v8  ;;  %p291_p12 = pnand %p290_p11, %p284_p8 }
  0x23   :  { %74 = vperm.xlu1 %252, %v364_v2   ;;  %79 = vperm.xlu0 %254, %v364_v2  }
  0x27   :  { %253 = vset.pattern.permute.xlu1 %v318_v9  ;;  %257 = vset.pattern.permute.xlu0 %v319_v10 }
  0x28   :  { %49 = vperm.xlu1 %253, %v364_v2   ;;  %59 = vperm.xlu0 %257, %v364_v2  }
  0x2c   :  { %255 = vset.pattern.permute.xlu1 %v320_v11  ;;  %260 = vset.pattern.permute.xlu0 %v321_v12 }
  0x2d   :  { %54 = vperm.xlu1 %255, %v364_v2   ;;  %94 = vperm.xlu0 %260, %v364_v2  }
  0x31   :  { %256 = vset.pattern.permute.xlu1 %v322_v13 }
  0x32   :  { %84 = vperm.xlu1 %256, %v364_v2  }
  0x36   :  { %258 = vset.pattern.permute.xlu1 %v323_v14 }
  0x37   :  { %89 = vperm.xlu1 %258, %v364_v2  }
  0x3b   :  { %259 = vset.pattern.permute.xlu1 %v324_v15 }
  0x3c   :  { %64 = vperm.xlu1 %259, %v364_v2  }
  0x93   :  { %v35_v16 = vpop.permute.xlu1 %34  ;;  %v25_v17 = vpop.permute.xlu0 %24 }
  0x94   :  { %v37_v18 = vmul.f32 %v35_v16, %v364_v2  ;;  %v27_v19 = vmul.f32 %v25_v17, %v364_v2 }
  0x96   :  { %108 = vrot.lane.b32.xlu0 %v37_v18, %s325_s0  ;;  %100 = vrot.lane.b32.xlu1 %v27_v19, %s326_s18 }
  0x98   :  { %v40_v20 = vpop.permute.xlu1 %39  ;;  %v30_v21 = vpop.permute.xlu0 %29 }
  0x99   :  { %v32_v22 = vmul.f32 %v30_v21, %v364_v2  ;;  %v42_v23 = vmul.f32 %v40_v20, %v364_v2 }
  0x9b   :  { %104 = vrot.lane.b32.xlu1 %v32_v22, %s327_s19 }
  0x9d   :  { %v45_v24 = vpop.permute.xlu1 %44  ;;  %v70_v25 = vpop.permute.xlu0 %69 }
  0x9e   :  { %v47_v26 = vmul.f32 %v45_v24, %v364_v2  ;;  %v72_v27 = vmul.f32 %v70_v25, %v364_v2 }
  0x9f   :  { %112 = vrot.lane.b32.xlu1 %v42_v23, %s328_s20 }
  0xa0   :  { %116 = vrot.lane.b32.xlu0 %v47_v26, %s329_s21 }
  0xa2   :  { %v75_v28 = vpop.permute.xlu1 %74  ;;  %v80_v29 = vpop.permute.xlu0 %79 }
  0xa3   :  { %v77_v30 = vmul.f32 %v75_v28, %v364_v2  ;;  %136 = vrot.lane.b32.xlu1 %v72_v27, %s330_s22  ;;  %v82_v31 = vmul.f32 %v80_v29, %v364_v2 }
  0xa5   :  { %140 = vrot.lane.b32.xlu0 %v77_v30, %s331_s23 }
  0xa7   :  { %v50_v32 = vpop.permute.xlu1 %49  ;;  %v60_v35 = vpop.permute.xlu0 %59 }
  0xa8   :  { %v52_v33 = vmul.f32 %v50_v32, %v364_v2  ;;  %v62_v37 = vmul.f32 %v60_v35, %v364_v2 }
  0xa9   :  { %144 = vrot.lane.b32.xlu0 %v82_v31, %s332_s24 }
  0xaa   :  { %120 = vrot.lane.b32.xlu1 %v52_v33, %s333_s25 }
  0xac   :  { %v55_v34 = vpop.permute.xlu1 %54  ;;  %v95_v41 = vpop.permute.xlu0 %94 }
  0xad   :  { %v57_v36 = vmul.f32 %v55_v34, %v364_v2  ;;  %v97_v43 = vmul.f32 %v95_v41, %v364_v2 }
  0xaf   :  { %124 = vrot.lane.b32.xlu1 %v57_v36, %s334_s26 }
  0xb1   :  { %v85_v38 = vpop.permute.xlu1 %84 }
  0xb2   :  { %v87_v39 = vmul.f32 %v85_v38, %v364_v2 }
  0xb3   :  { %128 = vrot.lane.b32.xlu1 %v62_v37, %s335_s27 }
  0xb4   :  { %148 = vrot.lane.b32.xlu0 %v87_v39, %s336_s28 }
  0xb6   :  { %v90_v40 = vpop.permute.xlu1 %89 }
  0xb7   :  { %v92_v42 = vmul.f32 %v90_v40, %v364_v2 }
  0xb9   :  { %152 = vrot.lane.b32.xlu0 %v92_v42, %s337_s29 }
  0xbb   :  { %v65_v44 = vpop.permute.xlu1 %64 }
  0xbc   :  { %v67_v45 = vmul.f32 %v65_v44, %v364_v2 }
  0xbd   :  { %156 = vrot.lane.b32.xlu0 %v97_v43, %s338_s30 }
  0xbe   :  { %132 = vrot.lane.b32.xlu1 %v67_v45, %s339_s2 }
  0xc2   :  { %190 = vrot.lane.b32.xlu1 %v98_v46, %s340_s3 }
 0x108   :  { %v101_v47 = vpop.permute.xlu1 %100  ;;  %v109_v49 = vpop.permute.xlu0 %108 }
 0x109   :  { %v160_v56 = vsel %vm159_vm0, %v364_v2, %v101_v47  ;;  %vm196_vm0 = vcmask 195584  }
 0x10d   :  { %v105_v48 = vpop.permute.xlu1 %104 }
 0x10e   :  { %v162_v57 = vsel %vm161_vm1, %v160_v56, %v105_v48 }
 0x10f   :  { %v164_v60 = vsel %vm163_vm2, %v162_v57, %v109_v49 }
 0x111   :  { %v113_v50 = vpop.permute.xlu1 %112 }
 0x112   :  { %v117_v51 = vpop.permute.xlu0 %116  ;;  %v166_v61 = vsel %vm165_vm3, %v164_v60, %v113_v50 }
 0x113   :  { %v168_v0 = vsel %vm167_vm4, %v166_v61, %v117_v51 }
 0x115   :  { %v137_v52 = vpop.permute.xlu1 %136 }
 0x117   :  { %v141_v53 = vpop.permute.xlu0 %140 }
 0x118   :  { %v180_v3 = vsel %vm179_vm7, %v137_v52, %v141_v53 }
 0x11b   :  { %v145_v55 = vpop.permute.xlu0 %144 }
 0x11c   :  { %v121_v54 = vpop.permute.xlu1 %120  ;;  %v182_v6 = vsel %vm181_vm9, %v180_v3, %v145_v55 }
 0x11d   :  { %v170_v1 = vsel %vm169_vm5, %v168_v0, %v121_v54 }
 0x121   :  { %v125_v58 = vpop.permute.xlu1 %124 }
 0x122   :  { %v172_v2 = vsel %vm171_vm6, %v170_v1, %v125_v58 }
 0x125   :  { %v129_v63 = vpop.permute.xlu1 %128 }
 0x126   :  { %v149_v59 = vpop.permute.xlu0 %148  ;;  %v174_v4 = vsel %vm173_vm8, %v172_v2, %v129_v63 }
 0x127   :  { %v184_v9 = vsel %vm183_vm11, %v182_v6, %v149_v59 }
 0x12b   :  { %v153_v62 = vpop.permute.xlu0 %152 }
 0x12c   :  { %v186_v11 = vsel %vm185_vm13, %v184_v9, %v153_v62 }
 0x12f   :  { %v157_v7 = vpop.permute.xlu0 %156 }
 0x130   :  { %v133_v5 = vpop.permute.xlu1 %132  ;;  %v188_v12 = vsel %vm187_vm14, %v186_v11, %v157_v7 }
 0x131   :  { %v176_v8 = vsel %vm175_vm10, %v174_v4, %v133_v5 }
 0x132   :  { %v178_v10 = vsel %vm177_vm12, %v176_v8, %v137_v52 }
 0x133   :  { %195 = vst [vmem:[#allocation5] sm:$0xff] %v178_v10 }
 0x134   :  { %v191_v13 = vpop.permute.xlu1 %190 }
 0x135   :  { %v194_v14 = vsel %vm193_vm15, %v188_v12, %v191_v13 }
 0x136   :  { %197 = vst.msk [vmem:[#allocation5 + $0x8] sm:$0xff] %vm196_vm0, %v194_v14 }
 0x137   :  { %294 = shalt.err (!%p291_p12)
}
 0x138   :  { %s295_s9 = scalar_lea.hbm %s412_s1, 256 }
 0x139   :  { %p296_p13 = scmp.ne.s32.totalorder %s412_s1, %s295_s9  ;;  %p299_p0 = scmp.lt.u32.totalorder %s295_s9, %s412_s1 }
 0x13b   :  { %p301_p1 = pnand %p299_p0, %p296_p13 }
 0x13d   :  { %304 = shalt.err (!%p301_p1)
}
 0x13e   :  { %207 = dma.vmem_to_hbm [thread:$0]  %s205_s5, 256, %s412_s1, [#allocation4]  }
 0x13f   :  { %307 = dma.done.wait [#allocation4], 256  }
 0x140   :  { %308 = vsyncadd [#allocation4], 4294967040 }
 0x141   :  { %211 = vsyncpa [#allocation3], 1 }
 0x142   :  { %212 = vsyncpa [#allocation4], 1 }

</bundles_post_ra>
